<compile_context>
chip_gen: v6e
topology: v6e:2x2x1
jax: 0.10.0
libtpu: 0.0.40
codegen_flags: <defaults>
</compile_context>

<pallas_src>
import functools

import jax
import jax.numpy as jnp
from jax import lax
from jax.experimental import pallas as pl
from jax.experimental.pallas import tpu as pltpu


def _is_pow2(n):
    return n > 0 and (n & (n - 1)) == 0


def _round_up(x, m):
    return ((x + m - 1) // m) * m


def _wrap_index(xf, size):
    """floor-coordinate (f32) -> index mod size, without integer division."""
    if _is_pow2(size):
        return xf.astype(jnp.int32) & (size - 1)
    # f32 floor-div wrap; correct possible off-by-one from f32 rounding.
    q = jnp.floor(xf * (1.0 / size))
    r = (xf - q * float(size)).astype(jnp.int32)
    r = jnp.where(r >= size, r - size, r)
    r = jnp.where(r < 0, r + size, r)
    return r


def _multi_texture_sample_kernel(pix_ref, tex_ref, out_ref, *,
                                 tex_h, tex_w, tw_pad, nth_pad, channels):
    tp = out_ref.shape[1]

    u = pix_ref[0:1, :]                        # (1, TP)
    v = pix_ref[1:2, :]                        # (1, TP)
    m = pix_ref[2:3, :].astype(jnp.int32)      # material id (exact small ints in f32)

    # texel-center convention: texel i center is at (i + 0.5) / size
    x = u * float(tex_w) - 0.5
    y = v * float(tex_h) - 0.5
    x0f = jnp.floor(x)
    y0f = jnp.floor(y)
    fx = x - x0f
    fy = y - y0f
    # degenerate 1-texel dims: fold both taps onto texel 0 exactly
    if tex_w == 1:
        fx = jnp.zeros_like(fx)
    if tex_h == 1:
        fy = jnp.zeros_like(fy)

    ix0 = _wrap_index(x0f, tex_w)
    iy0 = _wrap_index(y0f, tex_h)
    ix1 = jnp.where(ix0 == tex_w - 1, 0, ix0 + 1)
    iy1 = jnp.where(iy0 == tex_h - 1, 0, iy0 + 1)

    gx0 = 1.0 - fx
    gy0 = 1.0 - fy

    # ---- stage 1: row gather + y-blend on the MXU --------------------------
    # rowhot[(mat*TH + iy), p]: gy0 at iy0-row, fy at iy1-row (nested select;
    # rows are mutually exclusive per pixel — TH==1 handled by zeroing fy).
    r0 = m * tex_h + iy0                                       # (1, TP)
    r1 = m * tex_h + iy1
    rows = lax.broadcasted_iota(jnp.int32, (nth_pad, tp), 0)
    rowhot = jnp.where(rows == r0, gy0,
                       jnp.where(rows == r1, fy, 0.0))         # (NTH_pad, TP)
    s1 = jnp.dot(tex_ref[...], rowhot,
                 preferred_element_type=jnp.float32)           # (C*TW_pad, TP)
    s1 = s1.reshape(channels, tw_pad, tp)                      # free: TW_pad % 8 == 0

    # ---- stage 2: per-pixel column blend + sublane reduce -------------------
    cols = lax.broadcasted_iota(jnp.int32, (tw_pad, tp), 0)
    colhot = jnp.where(cols == ix0, gx0,
                       jnp.where(cols == ix1, fx, 0.0))        # (TW_pad, TP)
    out_ref[...] = jnp.sum(s1 * colhot[None, :, :], axis=1)    # (C, TP), lane-dense


def multi_texture2d_sample(textures, uv, f_mat, *, max_tile_pixels=1024):
    """textures: (N, TH, TW, C) f32, uv: (B, H, W, 2) f32, f_mat: (B, H, W) int.
    Returns (B, H, W, C) f32."""
    n, th, tw, c = textures.shape
    b, h, w, _ = uv.shape
    p = b * h * w
    nth = n * th
    tw_pad = _round_up(max(tw, 8), 8)
    nth_pad = _round_up(max(nth, 8), 8)

    # Pixel tile: lane-multiple, as large as allowed, but keep the 1-D grid at
    # >= ~8 steps when the pixel count allows (feeds both v7x TensorCores and
    # amortizes per-step pipeline overhead without collapsing to 1 step).
    lane = 128
    tile = max(lane, min(max_tile_pixels, _round_up(pl.cdiv(p, 8), lane)))
    p_pad = _round_up(p, tile)
    num_steps = p_pad // tile

    # Texture stack laid out for the factored gather:
    #   tex2[c*TW_pad + ix, mat*TH + iy] = textures[mat, iy, ix, c]
    # zero-padded on both axes; fully resident in VMEM (single buffer).
    # TODO(synk): for texture stacks too large for VMEM (esp. v7x's 64 MiB),
    # add a K-tiling grid axis (marked "arbitrary") with an f32 accumulator
    # instead of keeping the whole stack resident.
    tex2 = jnp.transpose(textures.astype(jnp.float32), (3, 2, 0, 1)).reshape(c, tw, nth)
    tex2 = jnp.pad(tex2, ((0, 0), (0, tw_pad - tw), (0, nth_pad - nth)))
    tex2 = tex2.reshape(c * tw_pad, nth_pad)

    # uv + f_mat packed into one lane-dense (3, P) f32 input (material indices
    # are small non-negative ints -> exact in f32, converted back in-kernel).
    # Padding pixels sample texture 0 at uv=(0,0) and are sliced off afterwards.
    uv_t = jnp.transpose(uv.astype(jnp.float32).reshape(p, 2))           # (2, P)
    pix = jnp.concatenate([uv_t, f_mat.astype(jnp.float32).reshape(1, p)], axis=0)
    if p_pad != p:
        pix = jnp.pad(pix, ((0, 0), (0, p_pad - p)))

    kernel = functools.partial(_multi_texture_sample_kernel,
                               tex_h=th, tex_w=tw, tw_pad=tw_pad,
                               nth_pad=nth_pad, channels=c)

    # VMEM budget: resident texture + double-buffered pixel/out tiles +
    # in-kernel intermediates (rowhot, s1, prod, colhot) + headroom, capped to
    # what the local chip actually has (v7x: 64 MiB; v5e/v6e: 128 MiB).
    tex_bytes = c * tw_pad * nth_pad * 4
    tile_io_bytes = 2 * (8 + c) * tile * 4
    interm_bytes = (nth_pad + 2 * c * tw_pad + 2 * tw_pad) * tile * 4
    needed = tex_bytes + tile_io_bytes + interm_bytes + (8 << 20)
    try:
        vmem_cap = int(0.75 * pltpu.get_tpu_info().vmem_capacity_bytes)
    except Exception:
        vmem_cap = 48 << 20          # conservative: safe even on v7x (64 MiB)
    vmem_limit = int(min(vmem_cap, max(32 << 20, needed)))

    out_t = pl.pallas_call(
        kernel,
        out_shape=jax.ShapeDtypeStruct((c, p_pad), jnp.float32),
        grid_spec=pltpu.PrefetchScalarGridSpec(
            num_scalar_prefetch=0,
            grid=(num_steps,),
            in_specs=[
                pl.BlockSpec((3, tile), lambda i: (0, i)),
                # whole texture resident in VMEM: one copy, no double buffer
                pl.BlockSpec(memory_space=pltpu.MemorySpace.VMEM),
            ],
            out_specs=pl.BlockSpec((c, tile), lambda i: (0, i)),
        ),
        compiler_params=pltpu.CompilerParams(
            dimension_semantics=("parallel",),     # megacore split on v7x
            vmem_limit_bytes=vmem_limit),
    )(pix, tex2)

    return jnp.transpose(out_t[:, :p]).reshape(b, h, w, c)


def _reference(textures, uv, f_mat):
    """Pure-JAX reference of the same semantics."""
    n, th, tw, c = textures.shape
    u = uv[..., 0]
    v = uv[..., 1]
    x = u * tw - 0.5
    y = v * th - 0.5
    x0f = jnp.floor(x)
    y0f = jnp.floor(y)
    fx = (x - x0f)[..., None]
    fy = (y - y0f)[..., None]
    ix0 = jnp.mod(x0f.astype(jnp.int32), tw)
    iy0 = jnp.mod(y0f.astype(jnp.int32), th)
    ix1 = jnp.mod(ix0 + 1, tw)
    iy1 = jnp.mod(iy0 + 1, th)
    m = f_mat.astype(jnp.int32)
    t00 = textures[m, iy0, ix0]
    t01 = textures[m, iy0, ix1]
    t10 = textures[m, iy1, ix0]
    t11 = textures[m, iy1, ix1]
    return ((1 - fx) * (1 - fy) * t00 + fx * (1 - fy) * t01
            + (1 - fx) * fy * t10 + fx * fy * t11)


if __name__ == "__main__":
    key = jax.random.PRNGKey(0)
    k_tex, k_uv, k_fm = jax.random.split(key, 3)

    # module "parameters": 3 textures of shape (TH=8, TW=8, C=4)
    N, TH, TW, C = 3, 8, 8, 4
    textures = jax.random.uniform(k_tex, (N, TH, TW, C), dtype=jnp.float32)

    # inputs: uv (B, H, W, 2) in [0, 1], f_mat (B, H, W) material indices
    B, H, W = 2, 16, 16
    uv = jax.random.uniform(k_uv, (B, H, W, 2), dtype=jnp.float32)
    f_mat = jax.random.randint(k_fm, (B, H, W), 0, N, dtype=jnp.int32)

    out = multi_texture2d_sample(textures, uv, f_mat)
    out = jax.block_until_ready(out)

    ref = _reference(textures, uv, f_mat)
    assert out.shape == (B, H, W, C)
    assert jnp.max(jnp.abs(out - ref)) < 1e-4, "mismatch vs reference"

    # TODO(synk): mipmapped sampling (uv_da path of dr.texture) not implemented;
    # the reference module call uses uv_da=None (pure bilinear, wrap boundary).
    # TODO(synk): optional bf16 resident texture for v6e/v7x skipped to keep the
    # 1e-4 tolerance; weights/accumulation stay f32.
    print("KERNEL_OK")
</pallas_src>

<mosaic_0001>
module attributes {stable_mosaic.version = 11 : i64} {
  func.func @_multi_texture_sample_kernel(%arg0: i32, %arg1: memref<3x128xf32, #tpu.memory_space<vmem>>, %arg2: memref<32x24xf32, #tpu.memory_space<vmem>>, %arg3: memref<4x128xf32, #tpu.memory_space<vmem>>) attributes {dimension_semantics = [#tpu.dimension_semantics<parallel>], iteration_bounds = array<i64: 4>, scalar_prefetch = 0 : i64, scratch_operands = 0 : i64, tpu.core_type = #tpu.core_type<tc>, window_params = [{transform_indices = @transform_0, window_bounds = array<i64: 3, 128>}, {pipeline_mode = #tpu.pipeline_mode<synchronous>, transform_indices = @transform_1, window_bounds = array<i64: 32, 24>}, {transform_indices = @transform_2, window_bounds = array<i64: 4, 128>}]} {
    %c0 = arith.constant 0 : index
    %c0_0 = arith.constant 0 : index
    %0 = vector.load %arg1[%c0, %c0_0] : memref<3x128xf32, #tpu.memory_space<vmem>>, vector<1x128xf32>
    %c1 = arith.constant 1 : index
    %c0_1 = arith.constant 0 : index
    %1 = vector.load %arg1[%c1, %c0_1] : memref<3x128xf32, #tpu.memory_space<vmem>>, vector<1x128xf32>
    %c2 = arith.constant 2 : index
    %c0_2 = arith.constant 0 : index
    %2 = vector.load %arg1[%c2, %c0_2] : memref<3x128xf32, #tpu.memory_space<vmem>>, vector<1x128xf32>
    %3 = arith.fptosi %2 : vector<1x128xf32> to vector<1x128xi32>
    %cst = arith.constant 8.000000e+00 : f32
    %4 = vector.broadcast %cst : f32 to vector<1x128xf32>
    %5 = arith.mulf %0, %4 : vector<1x128xf32>
    %cst_3 = arith.constant 5.000000e-01 : f32
    %6 = vector.broadcast %cst_3 : f32 to vector<1x128xf32>
    %7 = arith.subf %5, %6 : vector<1x128xf32>
    %cst_4 = arith.constant 8.000000e+00 : f32
    %8 = vector.broadcast %cst_4 : f32 to vector<1x128xf32>
    %9 = arith.mulf %1, %8 : vector<1x128xf32>
    %cst_5 = arith.constant 5.000000e-01 : f32
    %10 = vector.broadcast %cst_5 : f32 to vector<1x128xf32>
    %11 = arith.subf %9, %10 : vector<1x128xf32>
    %12 = math.floor %7 : vector<1x128xf32>
    %13 = math.floor %11 : vector<1x128xf32>
    %14 = arith.subf %7, %12 : vector<1x128xf32>
    %15 = arith.subf %11, %13 : vector<1x128xf32>
    %16 = arith.fptosi %12 : vector<1x128xf32> to vector<1x128xi32>
    %c7_i32 = arith.constant 7 : i32
    %17 = vector.broadcast %c7_i32 : i32 to vector<1x128xi32>
    %18 = arith.andi %16, %17 : vector<1x128xi32>
    %19 = arith.fptosi %13 : vector<1x128xf32> to vector<1x128xi32>
    %c7_i32_6 = arith.constant 7 : i32
    %20 = vector.broadcast %c7_i32_6 : i32 to vector<1x128xi32>
    %21 = arith.andi %19, %20 : vector<1x128xi32>
    %c7_i32_7 = arith.constant 7 : i32
    %22 = vector.broadcast %c7_i32_7 : i32 to vector<1x128xi32>
    %23 = arith.cmpi eq, %18, %22 : vector<1x128xi32>
    %c1_i32 = arith.constant 1 : i32
    %24 = vector.broadcast %c1_i32 : i32 to vector<1x128xi32>
    %25 = arith.addi %18, %24 : vector<1x128xi32>
    %c0_i32 = arith.constant 0 : i32
    %26 = vector.broadcast %c0_i32 : i32 to vector<1x128xi32>
    %27 = arith.select %23, %26, %25 : vector<1x128xi1>, vector<1x128xi32>
    %c7_i32_8 = arith.constant 7 : i32
    %28 = vector.broadcast %c7_i32_8 : i32 to vector<1x128xi32>
    %29 = arith.cmpi eq, %21, %28 : vector<1x128xi32>
    %c1_i32_9 = arith.constant 1 : i32
    %30 = vector.broadcast %c1_i32_9 : i32 to vector<1x128xi32>
    %31 = arith.addi %21, %30 : vector<1x128xi32>
    %c0_i32_10 = arith.constant 0 : i32
    %32 = vector.broadcast %c0_i32_10 : i32 to vector<1x128xi32>
    %33 = arith.select %29, %32, %31 : vector<1x128xi1>, vector<1x128xi32>
    %cst_11 = arith.constant 1.000000e+00 : f32
    %34 = vector.broadcast %cst_11 : f32 to vector<1x128xf32>
    %35 = arith.subf %34, %14 : vector<1x128xf32>
    %cst_12 = arith.constant 1.000000e+00 : f32
    %36 = vector.broadcast %cst_12 : f32 to vector<1x128xf32>
    %37 = arith.subf %36, %15 : vector<1x128xf32>
    %c8_i32 = arith.constant 8 : i32
    %38 = vector.broadcast %c8_i32 : i32 to vector<1x128xi32>
    %39 = arith.muli %3, %38 : vector<1x128xi32>
    %40 = arith.addi %39, %21 : vector<1x128xi32>
    %c8_i32_13 = arith.constant 8 : i32
    %41 = vector.broadcast %c8_i32_13 : i32 to vector<1x128xi32>
    %42 = arith.muli %3, %41 : vector<1x128xi32>
    %43 = arith.addi %42, %33 : vector<1x128xi32>
    %44 = tpu.iota {dimensions = array<i32: 0>} : vector<24x128xi32>
    %45 = vector.broadcast %40 : vector<1x128xi32> to vector<24x128xi32>
    %46 = arith.cmpi eq, %44, %45 : vector<24x128xi32>
    %47 = vector.broadcast %43 : vector<1x128xi32> to vector<24x128xi32>
    %48 = arith.cmpi eq, %44, %47 : vector<24x128xi32>
    %cst_14 = arith.constant 0.000000e+00 : f32
    %49 = vector.shape_cast %15 : vector<1x128xf32> to vector<1x128xf32>
    %50 = vector.broadcast %49 : vector<1x128xf32> to vector<24x128xf32>
    %51 = vector.broadcast %cst_14 : f32 to vector<24x128xf32>
    %52 = arith.select %48, %50, %51 : vector<24x128xi1>, vector<24x128xf32>
    %53 = vector.shape_cast %37 : vector<1x128xf32> to vector<1x128xf32>
    %54 = vector.broadcast %53 : vector<1x128xf32> to vector<24x128xf32>
    %55 = arith.select %46, %54, %52 : vector<24x128xi1>, vector<24x128xf32>
    %c0_15 = arith.constant 0 : index
    %c0_16 = arith.constant 0 : index
    %56 = vector.load %arg2[%c0_15, %c0_16] : memref<32x24xf32, #tpu.memory_space<vmem>>, vector<32x24xf32>
    %cst_17 = arith.constant dense<0.000000e+00> : vector<32x128xf32>
    %57 = tpu.matmul %56, %55, %cst_17 {dimension_numbers = #tpu.dot_dimension_numbers<[1], [0], [0], [1], [0, 0, 1, 1], [], []>} : vector<32x24xf32>, vector<24x128xf32>, vector<32x128xf32> -> vector<32x128xf32>
    %58 = vector.shape_cast %57 : vector<32x128xf32> to vector<4x8x128xf32>
    %59 = tpu.iota {dimensions = array<i32: 0>} : vector<8x128xi32>
    %60 = vector.broadcast %18 : vector<1x128xi32> to vector<8x128xi32>
    %61 = arith.cmpi eq, %59, %60 : vector<8x128xi32>
    %62 = vector.broadcast %27 : vector<1x128xi32> to vector<8x128xi32>
    %63 = arith.cmpi eq, %59, %62 : vector<8x128xi32>
    %cst_18 = arith.constant 0.000000e+00 : f32
    %64 = vector.shape_cast %14 : vector<1x128xf32> to vector<1x128xf32>
    %65 = vector.broadcast %64 : vector<1x128xf32> to vector<8x128xf32>
    %66 = vector.broadcast %cst_18 : f32 to vector<8x128xf32>
    %67 = arith.select %63, %65, %66 : vector<8x128xi1>, vector<8x128xf32>
    %68 = vector.shape_cast %35 : vector<1x128xf32> to vector<1x128xf32>
    %69 = vector.broadcast %68 : vector<1x128xf32> to vector<8x128xf32>
    %70 = arith.select %61, %69, %67 : vector<8x128xi1>, vector<8x128xf32>
    %71 = vector.shape_cast %70 : vector<8x128xf32> to vector<1x8x128xf32>
    %72 = vector.broadcast %71 : vector<1x8x128xf32> to vector<4x8x128xf32>
    %73 = arith.mulf %58, %72 : vector<4x8x128xf32>
    %cst_19 = arith.constant dense<0.000000e+00> : vector<4x128xf32>
    %74 = vector.multi_reduction <add>, %73, %cst_19 [1] : vector<4x8x128xf32> to vector<4x128xf32>
    %c0_20 = arith.constant 0 : index
    %c0_21 = arith.constant 0 : index
    %75 = vector.load %arg3[%c0_20, %c0_21] : memref<4x128xf32, #tpu.memory_space<vmem>>, vector<4x128xf32>
    tpu.vector_store %arg3[%c0_20, %c0_21], %74 {strides = array<i32>} : memref<4x128xf32, #tpu.memory_space<vmem>>, vector<4x128xf32>,
    return
  }
  func.func @transform_0(%arg0: i32) -> (i32, i32) {
    %c0_i32 = arith.constant 0 : i32
    %c0_i32_0 = arith.constant 0 : i32
    return %c0_i32, %arg0 : i32, i32
  }
  func.func @transform_1(%arg0: i32) -> (i32, i32) {
    %c0_i32 = arith.constant 0 : i32
    %c0_i32_0 = arith.constant 0 : i32
    %c0_i32_1 = arith.constant 0 : i32
    return %c0_i32, %c0_i32_0 : i32, i32
  }
  func.func @transform_2(%arg0: i32) -> (i32, i32) {
    %c0_i32 = arith.constant 0 : i32
    %c0_i32_0 = arith.constant 0 : i32
    return %c0_i32, %arg0 : i32, i32
  }
}

</mosaic_0001>

<bundles_post_ra>
// kernel: tpu_custom_call.1
= control target key start
LH: loop header
LB: loop body
LE: loop exit
PB: predicated region body
PF: predicated region fallthrough
CT: control target
= control target key end

     0   :  { %7 = vsyncpa [#allocation3], 0  ;;  %s724_s0 = inlined_call_operand.vmem [shape: f32[3,512], index: 0, kind: input, shape index: {}]   ;;  %s725_s1 = inlined_call_operand.vmem [shape: f32[32,24], index: 1, kind: input, shape index: {}]   ;;  %s726_s2 = inlined_call_operand.hbm [shape: f32[4,512], index: 2, kind: output, shape index: {}]  }
   0x1   :  { %9 = vsyncpa [#allocation3 + $0x1], 0  ;;  %s597_s9 = smov 0   ;;  %s599_s10 = smov 0  }
   0x2   :  { %s601_s11 = smov 0   ;;  %s603_s12 = smov 0  }
   0x3 LB: > { %s618_s13 = sadd.s32 4294967295, %s579_s12   ;;  %s433_s14 = sadd.s32 4294967294, %s579_s12   ;;  %s579_s12 = sphi %s603_s12, %s732_s12   ;;  %s575_s11 = sphi %s601_s11, %s731_s11   ;;  %s571_s10 = sphi %s599_s10, %s730_s10   ;;  %s567_s9 = sphi %s597_s9, %s729_s9  }
   0x4   : > { %s622_s15 = sadd.s32 1, %s579_s12   ;;  %s69_s16 = sadd.s32 1, %s575_s11 }
   0x5   : > { %s66_s17 = ssub.s32 %s579_s12, %s622_s15  ;;  %p79_p0 = scmp.ne.s32.totalorder %s575_s11, %s571_s10 }
   0x6   : > { %p67_p1 = scmp.eq.s32.totalorder %s66_s17, 0  ;;  %p80_p2 = scmp.eq.s32.totalorder %s618_s13, 3 }
   0x7   : > { %p85_p3 = scmp.ne.s32.totalorder %s571_s10, %s567_s9  ;;  %p86_p4 = scmp.eq.s32.totalorder %s433_s14, 3 }
   0x8   : > { %s633_s18 = scalar_select %p67_p1, %s575_s11, %s69_s16  }
   0x9   : > { %p635_p5 = por %p80_p2, %p79_p0  ;;  %p639_p6 = por %p86_p4, %p85_p3 }
   0xa   : > { %p436_p7 = scmp.ge.s32.totalorder %s579_s12, 1  ;;  %p114_p8 = scmp.lt.s32.totalorder %s579_s12, 5 }
   0xc   : > { %p115_p9 = pnand %p436_p7, %p114_p8 }
   0xd   : > { %p135_p10 = scmp.lt.s32.totalorder (!%p115_p9), %s618_s13, 3  ;;  %s132_s6 = sand.u32 (!%p115_p9), 1, %s571_s10  }
   0xe   : > { %118 = sbr.rel (%p115_p9) target bundleno = 277 (0x115), region = 28  ;;  %s437_s7 = sshll.u32 (!%p115_p9), %s132_s6, 2 }
   0xf   : > { %s446_s8 = sshll.u32 (!%p115_p9), %s618_s13, 6  ;;  %s134_s14 = scalar_lea.vmem (!%p115_p9), [#allocation2], %s437_s7 }
  0x10   : > { %s374_s16 = sshll.u32 (!%p115_p9), %s134_s14, 4  ;;  %s687_s22 = scalar_lea.hbm (!%p115_p9), %s726_s2, %s446_s8  ;;  %s375_s16 = int_to_ptr.vmem [resolvable:$true] %s374_s16 }
  0x11   : > { %s361_s23 = scalar_lea.sflag (!%p115_p9), [#allocation3], %s132_s6  ;;  %s519_s24 = scalar_lea.vmem (!%p115_p9), %s375_s16, 64 }
  0x12   : > { %p520_p11 = scmp.ne.s32.totalorder (!%p115_p9), %s375_s16, %s519_s24 }
  0x13   : > { %v198_v0 = vld [vmem:[%s725_s1] sm:$0xff]  ;;  %vm202_vm0 = vcmask 195584   ;;  %v200_v1 = vld [vmem:[%s725_s1 + $0x10] sm:$0xff]  ;;  %s136_s25 = scalar_select %p135_p10, %s618_s13, 3  ;;  %v166_v7 = vlaneseq  ;;  %v199_v34 = vld [vmem:[%s725_s1 + $0x8] sm:$0xff]  ;;  %vm352_vm11 = vcmask 1041409  }
  0x14   : > { %462 = vmatprep.mubr.msk.f32.mxu0 %vm202_vm0, %v198_v0  ;;  %465 = vmatprep.mubr.msk.f32.mxu1 %vm202_vm0, %v200_v1  ;;  %v201_v35 = vld [vmem:[%s725_s1 + $0x18] sm:$0xff]  ;;  %vm354_vm12 = vcmask 1042434   ;;  %vm356_vm13 = vcmask 1043459   ;;  %p521_p12 = pnand %p520_p11, %p635_p5  ;;  %s581_s13 = smov [#allocation2]  }
  0x15   : > { %s438_s26 = sshll.u32 %s136_s25, 2  ;;  %v662_v11 = vshrl.u32 %v166_v7, 7  ;;  %s523_s25 = sshll.u32 %s581_s13, 4  ;;  %s524_s25 = int_to_ptr.vmem [resolvable:$false] %s523_s25 }
  0x16   : > { %s658_s29 = scalar_lea.vmem %s724_s0, %s438_s26  ;;  %p522_p13 = pneg %p521_p12 }
  0x17   : > { %v140_v2 = vld [vmem:[%s658_s29 + $0x1] sm:$0x1]  ;;  %v141_v3 = vld [vmem:[%s658_s29 + $0x2] sm:$0x1]  ;;  %v172_v16 = vsub.s32 0, %v662_v11  ;;  %v169_v21 = vadd.s32 16, %v662_v11  ;;  %p526_p0 = scmp.lt.s32.totalorder %s375_s16, %s524_s25 }
  0x18   : > { %v474_v4 = vtrunc.f32 %v141_v3  ;;  %v145_v5 = vmul.f32 8.0, %v140_v2  ;;  %v168_v23 = vadd.s32 8, %v662_v11  ;;  %v139_v36 = vld [vmem:[%s658_s29] sm:$0x1]  ;;  %s525_s26 = scalar_lea.vmem %s524_s25, 128 }
  0x19   : > { %v143_v37 = vmul.f32 8.0, %v139_v36  ;;  %p527_p1 = scmp.lt.s32.totalorder %s525_s26, %s519_s24 }
  0x1a   : > { %v440_v6 = vadd.f32 -0.5, %v145_v5  ;;  %v475_v8 = vcvt.f32.s32 %v474_v4 }
  0x1b   : > { %v439_v38 = vadd.f32 -0.5, %v143_v37  ;;  %p528_p2 = por %p527_p1, %p526_p0 }
  0x1c   : > { %v148_v9 = vfloor.f32 %v440_v6  ;;  %v163_v13 = vmul.u32 8, %v475_v8 }
  0x1d   : > { %v147_v39 = vfloor.f32 %v439_v38  ;;  %p529_p3 = pnand %p528_p2, %p522_p13 }
  0x1e   : > { %v478_v10 = vtrunc.f32 %v148_v9  ;;  %v150_v14 = vsub.f32 %v440_v6, %v148_v9 }
  0x1f   : > { %v476_v40 = vtrunc.f32 %v147_v39  ;;  %v149_v45 = vsub.f32 %v439_v38, %v147_v39 }
  0x20   : > { %v479_v12 = vcvt.f32.s32 %v478_v10  ;;  %v162_v19 = vsub.f32 1.0, %v150_v14  ;;  %v187_v25 = vrot.slane %v150_v14, %v172_v16 }
  0x21   : > { %v477_v41 = vcvt.f32.s32 %v476_v40  ;;  %v161_v47 = vsub.f32 1.0, %v149_v45  ;;  %v313_v49 = vrot.slane %v149_v45, %v172_v16 }
  0x22   : > { %v154_v15 = vand.u32 7, %v479_v12  ;;  %v194_v27 = vrot.slane %v162_v19, %v172_v16 }
  0x23   : > { %v152_v42 = vand.u32 7, %v477_v41  ;;  %v318_v50 = vrot.slane %v161_v47, %v172_v16 }
  0x24   : > { %vm158_vm1 = vcmp.eq.s32.totalorder %v154_v15, 7  ;;  %v159_v17 = vadd.s32 1, %v154_v15  ;;  %v164_v18 = vadd.s32 %v163_v13, %v154_v15 }
  0x25   : > { %v156_v43 = vadd.s32 1, %v152_v42  ;;  %vm155_vm8 = vcmp.eq.s32.totalorder %v152_v42, 7  ;;  %v303_v48 = vrot.slane %v152_v42, %v172_v16 }
  0x26   : > { %v160_v20 = vsel %vm158_vm1, 0, %v159_v17  ;;  %v173_v22 = vrot.slane %v164_v18, %v172_v16 }
  0x27   : > { %v165_v24 = vadd.s32 %v163_v13, %v160_v20  ;;  %v157_v44 = vsel %vm155_vm8, 0, %v156_v43  ;;  %vm304_vm10 = vcmp.eq.s32.totalorder %v662_v11, %v303_v48 }
  0x28   : > { %vm176_vm2 = vcmp.eq.s32.totalorder %v169_v21, %v173_v22  ;;  %vm175_vm3 = vcmp.eq.s32.totalorder %v168_v23, %v173_v22  ;;  %vm174_vm7 = vcmp.eq.s32.totalorder %v662_v11, %v173_v22  ;;  %v308_v46 = vrot.slane %v157_v44, %v172_v16 }
  0x29   : > { %v180_v26 = vrot.slane %v165_v24, %v172_v16 }
  0x2a   : > { %vm309_vm9 = vcmp.eq.s32.totalorder %v662_v11, %v308_v46 }
  0x2b   : > { %vm183_vm4 = vcmp.eq.s32.totalorder %v169_v21, %v180_v26  ;;  %vm182_vm5 = vcmp.eq.s32.totalorder %v168_v23, %v180_v26  ;;  %vm181_vm6 = vcmp.eq.s32.totalorder %v662_v11, %v180_v26  ;;  %v314_v51 = vsel %vm309_vm9, %v313_v49, 0.0 }
  0x2c   : > { %v190_v28 = vsel %vm183_vm4, %v187_v25, 0.0  ;;  %v189_v29 = vsel %vm182_vm5, %v187_v25, 0.0  ;;  %v188_v30 = vsel %vm181_vm6, %v187_v25, 0.0  ;;  %v319_v52 = vsel %vm304_vm10, %v318_v50, %v314_v51 }
  0x2d   : > { %v197_v31 = vsel %vm176_vm2, %v194_v27, %v190_v28  ;;  %v196_v32 = vsel %vm175_vm3, %v194_v27, %v189_v29  ;;  %v195_v33 = vsel %vm174_vm7, %v194_v27, %v188_v30 }
  0x2e   : > { %456 = vmatprep.subr.mxu0 %v197_v31  ;;  %468 = vmatprep.subr.mxu1 %v197_v31 }
  0x2f   : > { %457 = vmatpush3.msra.mxu0 %v197_v31  ;;  %471 = vmatpush3.msra.mxu1 %v197_v31 }
  0x30   : > { %458 = vmatprep.subr.mxu0 %v196_v32  ;;  %469 = vmatprep.subr.mxu1 %v196_v32 }
  0x31   : > { %459 = vmatpush3.msra.mxu0 %v196_v32  ;;  %472 = vmatpush3.msra.mxu1 %v196_v32 }
  0x32   : > { %460 = vmatprep.subr.mxu0 %v195_v33  ;;  %470 = vmatprep.subr.mxu1 %v195_v33 }
  0x33   : > { %461 = vmatpush3.msra.mxu0 %v195_v33  ;;  %473 = vmatpush3.msra.mxu1 %v195_v33 }
  0x34   : > { %463 = vmatmul.mubr.msk.f32.vlgmr.msra.gmra.mxu0 %vm202_vm0, %v199_v34  ;;  %466 = vmatmul.mubr.msk.f32.vlgmr.msra.gmra.mxu1 %vm202_vm0, %v201_v35 }
  0xf4   : > { %v464_v53 = vpop.f32.mrf.mxu0  ;;  %v467_v54 = vpop.f32.mrf.mxu1 }
  0xf5   : > { %v321_v55 = vmul.f32 %v464_v53, %v319_v52  ;;  %v323_v56 = vmul.f32 %v467_v54, %v319_v52 }
  0xf6   : > { %v281_v57 = vpop.f32.mrf.mxu0  ;;  %v291_v58 = vpop.f32.mrf.mxu1 }
  0xf7   : > { %v330_v59 = vrot.slane %v321_v55, 4  ;;  %v342_v60 = vrot.slane %v323_v56, 4  ;;  %v320_v61 = vmul.f32 %v319_v52, %v281_v57  ;;  %v322_v62 = vmul.f32 %v319_v52, %v291_v58 }
  0xf9   : > { %v331_v63 = vadd.f32 %v330_v59, %v321_v55  ;;  %v343_v0 = vadd.f32 %v342_v60, %v323_v56  ;;  %v324_v1 = vrot.slane %v320_v61, 4  ;;  %v336_v2 = vrot.slane %v322_v62, 4 }
  0xfb   : > { %v332_v3 = vrot.slane %v331_v63, 2  ;;  %v344_v4 = vrot.slane %v343_v0, 2  ;;  %v325_v5 = vadd.f32 %v324_v1, %v320_v61  ;;  %v337_v6 = vadd.f32 %v336_v2, %v322_v62 }
  0xfd   : > { %v333_v7 = vadd.f32 %v332_v3, %v331_v63  ;;  %v345_v8 = vadd.f32 %v344_v4, %v343_v0  ;;  %v326_v9 = vrot.slane %v325_v5, 2  ;;  %v338_v10 = vrot.slane %v337_v6, 2 }
  0xff   : > { %v334_v11 = vrot.slane %v333_v7, 1  ;;  %v327_v12 = vadd.f32 %v326_v9, %v325_v5  ;;  %v339_v13 = vadd.f32 %v338_v10, %v337_v6  ;;  %v346_v14 = vrot.slane %v345_v8, 1 }
 0x101   : > { %v328_v15 = vrot.slane %v327_v12, 1  ;;  %v340_v16 = vrot.slane %v339_v13, 1  ;;  %v335_v17 = vadd.f32 %v334_v11, %v333_v7  ;;  %v347_v20 = vadd.f32 %v346_v14, %v345_v8 }
 0x103   : > { %v329_v18 = vadd.f32 %v328_v15, %v327_v12  ;;  %v341_v19 = vadd.f32 %v340_v16, %v339_v13 }
 0x105   : > { %v353_v21 = vsel %vm352_vm11, %v335_v17, %v329_v18 }
 0x106   : > { %v355_v22 = vsel %vm354_vm12, %v341_v19, %v353_v21 }
 0x107   : > { %v357_v23 = vsel %vm356_vm13, %v347_v20, %v355_v22 }
 0x108   : > { %359 = vst [vmem:[%s134_s14] sm:$0xf] %v357_v23 }
 0x109   : > { %532 = shalt.err (!%p529_p3)
}
 0x10a   : > { %s533_s27 = scalar_lea.hbm %s687_s22, 64  ;;  %s537_s30 = scalar_lea.hbm %s726_s2, 256 }
 0x10b   : > { %p534_p4 = scmp.ne.s32.totalorder %s687_s22, %s533_s27  ;;  %p538_p9 = scmp.lt.s32.totalorder %s687_s22, %s726_s2 }
 0x10c   : > { %p539_p10 = scmp.lt.s32.totalorder %s537_s30, %s533_s27 }
 0x10d   : > { %p535_p7 = pnand %p534_p4, %p635_p5 }
 0x10e   : > { %p540_p11 = por %p539_p10, %p538_p9 }
 0x10f   : > { %p536_p8 = pneg %p535_p7 }
 0x111   : > { %p541_p12 = pnand %p540_p11, %p536_p8 }
 0x113   : > { %544 = shalt.err (!%p541_p12)
}
 0x114   : > { %480 = dma.vmem_to_hbm [thread:$0]  (%p635_p5), %s375_s16, 64, %s687_s22, %s361_s23  }
 0x115 PF: > { %p486_p13 = scmp.ge.s32.totalorder %s579_s12, 2  ;;  %s386_s5 = sand.u32 1, %s567_s9  }
 0x116   : > { %s387_s6 = scalar_lea.sflag [#allocation3], %s386_s5 }
 0x117   : > { %p483_p0 = pnand %p486_p13, %p639_p6 }
 0x119   : > { %p484_p1 = pneg %p483_p0 }
 0x11b   : > { %562 = dma.done.wait (%p484_p1), %s387_s6, 64  }
 0x11c   : > { %564 = vsyncadd (%p484_p1), %s387_s6, 4294967232  ;;  %p12_p2 = scmp.ge.s32.totalorder %s622_s15, 6   ;;  %s729_s9 = smov %s571_s10 }
 0x11d   : > { %s730_s10 = smov %s575_s11  ;;  %s731_s11 = smov %s633_s18 }
 0x11e   : > { %s732_s12 = smov %s622_s15  ;;  %14 = sbr.rel (!%p12_p2) target bundleno = 3 (0x3), region = 63 }
 0x123   :  { %392 = vsyncpa [#allocation3], 1 }
 0x124   :  { %394 = vsyncpa [#allocation3 + $0x1], 1 }

</bundles_post_ra>
